<compile_context>
chip_gen: v7x
topology: tpu7x:2x2x1
jax: 0.10.0
libtpu: 0.0.40
codegen_flags: <defaults>
</compile_context>

<pallas_src>
import functools

import jax
import jax.numpy as jnp
from jax import lax
from jax.experimental import pallas as pl
from jax.experimental.pallas import tpu as pltpu


# --------------------------------------------------------------------------- #
# Pallas kernel: fused flatten(2).transpose(1,2) + Linear projection
# --------------------------------------------------------------------------- #
def _hybrid_embed_proj_kernel(x_ref, w_ref, b_ref, o_ref):
    """x_ref: (nb, C, tp)  bf16  channel-major feature-map block
       w_ref: (C, E)       bf16  projection weight, (in, out) layout (VMEM-resident)
       b_ref: (1, E)       f32   projection bias
       o_ref: (nb, tp, E)  out   output block
    """
    w = w_ref[...]          # (C, E)
    bias = b_ref[...]       # (1, E) — broadcasts over the tp rows

    # Contract the channel dim of each channel-major slice directly:
    # (C, tp) x (C, E) -> (tp, E).  This *is* flatten + transpose + matmul,
    # with no explicit transpose materialized anywhere (MXU handles the
    # transposed-LHS contraction natively).
    for i in range(x_ref.shape[0]):        # static unroll over the batch block
        y = lax.dot_general(
            x_ref[i], w,
            dimension_numbers=(((0,), (0,)), ((), ())),
            preferred_element_type=jnp.float32)           # (tp, E) f32
        o_ref[i] = (y + bias).astype(o_ref.dtype)


def _pick_tp(P, cap):
    """Largest multiple of 128 that divides P and is <= cap; else full P
    (a block equal to the full array dim is always a legal BlockSpec size)."""
    if P <= cap:
        return P
    t = (cap // 128) * 128
    while t >= 128:
        if P % t == 0:
            return t
        t -= 128
    return P


def _divisors_desc(n):
    return [d for d in range(n, 0, -1) if n % d == 0]


def _block_vmem_bytes(nb, tp, C, E, compute_bytes, out_bytes):
    x_blk = nb * C * tp * compute_bytes
    o_blk = nb * tp * E * out_bytes
    w_blk = C * E * compute_bytes
    b_blk = E * 4
    # Conservative: assume everything is double-buffered.
    return 2 * (x_blk + o_blk + w_blk + b_blk)


def hybrid_embed_project(feat, proj_w, proj_b, *,
                         compute_dtype=jnp.bfloat16,
                         out_dtype=jnp.float32,
                         tp_cap=512,
                         vmem_block_budget=40 * 1024 * 1024,
                         vmem_limit_bytes=48 * 1024 * 1024):
    """Pallas-backed  `feat.flatten(2).transpose(1, 2) @ proj_w.T + proj_b`.

    feat:   (B, C_feat, H, W) float32  — backbone output feature map
    proj_w: (embed_dim, C_feat)        — nn.Linear weight layout (out, in)
    proj_b: (embed_dim,)               — nn.Linear bias
    returns (B, H*W, embed_dim) out_dtype
    """
    B, C, H, W = feat.shape
    P = H * W
    E, C_w = proj_w.shape
    assert C_w == C, "proj weight in_features must match backbone feature_dim"

    # flatten(2): keep channel-major layout; the transpose is fused into the
    # kernel's contraction so no extra HBM pass is needed.  (Under jit the
    # bf16 cast fuses into the backbone epilogue.)
    x = feat.reshape(B, C, P).astype(compute_dtype)
    w = proj_w.T.astype(compute_dtype)              # (C, E), (in, out) layout
    b = proj_b.reshape(1, E).astype(jnp.float32)

    compute_bytes = jnp.dtype(compute_dtype).itemsize
    out_bytes = jnp.dtype(out_dtype).itemsize

    tp = _pick_tp(P, tp_cap)        # patch-tile (multiple of 128 or full P)
    p_tiles = P // tp

    # TODO(synk): if the full (C_feat, embed_dim) weight ever exceeded the VMEM
    # budget a reduction grid axis would be needed; realistic HybridEmbed
    # shapes (C<=2048, E<=1024 -> ~4 MiB bf16) always fit, so it is omitted.
    fitting = [nb for nb in _divisors_desc(B)
               if _block_vmem_bytes(nb, tp, C, E, compute_bytes, out_bytes)
               <= vmem_block_budget]
    if not fitting:
        fitting = [1]
    # Prefer the largest batch block that still leaves >= 2 grid steps so the
    # parallel axes can feed both TensorCores on v7x.
    nb = next((c for c in fitting if (B // c) * p_tiles >= 2), fitting[0])

    grid = (B // nb, p_tiles)

    cost = pl.CostEstimate(
        flops=2 * B * P * C * E,
        transcendentals=0,
        bytes_accessed=(B * C * P * compute_bytes   # feature map read once
                        + C * E * compute_bytes     # weight read once (resident)
                        + E * 4                     # bias
                        + B * P * E * out_bytes))   # output write

    out = pl.pallas_call(
        _hybrid_embed_proj_kernel,
        out_shape=jax.ShapeDtypeStruct((B, P, E), out_dtype),
        grid_spec=pltpu.PrefetchScalarGridSpec(
            num_scalar_prefetch=0,
            grid=grid,
            in_specs=[
                # feature map (B, C, P): block (nb, C, tp)
                pl.BlockSpec((nb, C, tp), lambda bb, ip: (bb, 0, ip)),
                # weight (C, E): whole array, constant index -> DMA'd once
                pl.BlockSpec((C, E), lambda bb, ip: (0, 0)),
                # bias (1, E): whole array, constant index
                pl.BlockSpec((1, E), lambda bb, ip: (0, 0)),
            ],
            out_specs=pl.BlockSpec((nb, tp, E), lambda bb, ip: (bb, ip, 0)),
        ),
        compiler_params=pltpu.CompilerParams(
            dimension_semantics=("parallel", "parallel"),
            vmem_limit_bytes=vmem_limit_bytes),
        cost_estimate=cost,
    )(x, w, b)
    return out


# --------------------------------------------------------------------------- #
# Stand-in backbone + end-to-end forward
# --------------------------------------------------------------------------- #
def _toy_backbone(x, conv_w, conv_b):
    # TODO(synk): the real HybridEmbed backbone is an arbitrary user-supplied
    # CNN (e.g. a ResNet feature extractor); it has no fixed spec to translate,
    # so it stays in plain XLA here — only the HybridEmbed-specific
    # flatten/transpose/projection runs as a Pallas kernel.
    y = lax.conv_general_dilated(
        x, conv_w, window_strides=(4, 4), padding="SAME",
        dimension_numbers=("NCHW", "OIHW", "NCHW"))
    y = jax.nn.relu(y + conv_b[None, :, None, None])
    return (y,)   # mimic "backbone(x)[-1]"


def hybrid_embed_forward(x_image, backbone, proj_w, proj_b):
    feat = backbone(x_image)[-1]                       # (B, C_feat, Hf, Wf)
    return hybrid_embed_project(feat, proj_w, proj_b)  # (B, P, embed_dim)


# --------------------------------------------------------------------------- #
# Pure-JAX reference (same bf16 MXU operands, f32 accumulation)
# --------------------------------------------------------------------------- #
def _reference(feat, proj_w, proj_b, compute_dtype=jnp.bfloat16):
    B, C, H, W = feat.shape
    xt = jnp.transpose(feat.reshape(B, C, H * W), (0, 2, 1)).astype(compute_dtype)
    w = proj_w.T.astype(compute_dtype)
    y = jnp.einsum("bpc,ce->bpe", xt, w, preferred_element_type=jnp.float32)
    return y + proj_b.astype(jnp.float32)[None, None, :]


if __name__ == "__main__":
    # Small shapes consistent with the module: image (2, 3, 64, 64),
    # feature map (2, 64, 16, 16) -> 256 patches, embed_dim 128.
    B, IN_CH, IMG = 2, 3, 64
    FEAT_DIM, EMBED_DIM = 64, 128

    key = jax.random.PRNGKey(0)
    k1, k2, k3, k4, k5 = jax.random.split(key, 5)

    x_image = jax.random.normal(k1, (B, IN_CH, IMG, IMG), dtype=jnp.float32)
    conv_w = jax.random.normal(k2, (FEAT_DIM, IN_CH, 4, 4), dtype=jnp.float32) * 0.1
    conv_b = jax.random.normal(k3, (FEAT_DIM,), dtype=jnp.float32) * 0.1
    # nn.Linear(feature_dim, embed_dim): weight is (out, in), bias (out,)
    proj_w = jax.random.normal(k4, (EMBED_DIM, FEAT_DIM), dtype=jnp.float32) * 0.02
    proj_b = jax.random.normal(k5, (EMBED_DIM,), dtype=jnp.float32) * 0.02

    backbone = functools.partial(_toy_backbone, conv_w=conv_w, conv_b=conv_b)

    # jit the whole forward so the feature-map bf16 cast fuses into the
    # backbone epilogue instead of being a standalone HBM pass.
    fwd = jax.jit(lambda img: hybrid_embed_forward(img, backbone, proj_w, proj_b))

    out = fwd(x_image)
    out = jax.block_until_ready(out)

    feat = backbone(x_image)[-1]
    Hf, Wf = feat.shape[-2:]
    ref = _reference(feat, proj_w, proj_b)

    assert out.shape == (B, Hf * Wf, EMBED_DIM), out.shape
    max_err = float(jnp.max(jnp.abs(out - ref)))
    assert jnp.allclose(out, ref, atol=1e-3, rtol=1e-3), f"mismatch, max_err={max_err}"

    print("KERNEL_OK")
</pallas_src>

<mosaic_0001>
module attributes {stable_mosaic.version = 11 : i64} {
  func.func @_hybrid_embed_proj_kernel(%arg0: i32, %arg1: i32, %arg2: memref<1x64x256xbf16, #tpu.memory_space<vmem>>, %arg3: memref<64x128xbf16, #tpu.memory_space<vmem>>, %arg4: memref<1x128xf32, #tpu.memory_space<vmem>>, %arg5: memref<1x256x128xf32, #tpu.memory_space<vmem>>) attributes {dimension_semantics = [#tpu.dimension_semantics<parallel>, #tpu.dimension_semantics<parallel>], iteration_bounds = array<i64: 2, 1>, scalar_prefetch = 0 : i64, scratch_operands = 0 : i64, tpu.core_type = #tpu.core_type<tc>, window_params = [{transform_indices = @transform_0, window_bounds = array<i64: 1, 64, 256>}, {pipeline_mode = #tpu.pipeline_mode<synchronous>, transform_indices = @transform_1, window_bounds = array<i64: 64, 128>}, {pipeline_mode = #tpu.pipeline_mode<synchronous>, transform_indices = @transform_2, window_bounds = array<i64: 1, 128>}, {transform_indices = @transform_3, window_bounds = array<i64: 1, 256, 128>}]} {
    %c0 = arith.constant 0 : index
    %c0_0 = arith.constant 0 : index
    %0 = vector.load %arg3[%c0, %c0_0] : memref<64x128xbf16, #tpu.memory_space<vmem>>, vector<64x128xbf16>
    %c0_1 = arith.constant 0 : index
    %c0_2 = arith.constant 0 : index
    %1 = vector.load %arg4[%c0_1, %c0_2] : memref<1x128xf32, #tpu.memory_space<vmem>>, vector<1x128xf32>
    %c0_3 = arith.constant 0 : index
    %c0_4 = arith.constant 0 : index
    %c0_5 = arith.constant 0 : index
    %2 = vector.load %arg2[%c0_3, %c0_4, %c0_5] : memref<1x64x256xbf16, #tpu.memory_space<vmem>>, vector<1x64x256xbf16>
    %3 = vector.shape_cast %2 : vector<1x64x256xbf16> to vector<64x256xbf16>
    %cst = arith.constant dense<0.000000e+00> : vector<256x128xf32>
    %4 = tpu.matmul %3, %0, %cst {dimension_numbers = #tpu.dot_dimension_numbers<[0], [0], [1], [1], [0, 1, 1, 1], [], []>} : vector<64x256xbf16>, vector<64x128xbf16>, vector<256x128xf32> -> vector<256x128xf32>
    %5 = vector.broadcast %1 : vector<1x128xf32> to vector<256x128xf32>
    %6 = arith.addf %4, %5 : vector<256x128xf32>
    %c0_6 = arith.constant 0 : index
    %c0_7 = arith.constant 0 : index
    %c0_8 = arith.constant 0 : index
    %7 = vector.load %arg5[%c0_6, %c0_7, %c0_8] : memref<1x256x128xf32, #tpu.memory_space<vmem>>, vector<1x256x128xf32>
    %8 = vector.shape_cast %7 : vector<1x256x128xf32> to vector<256x128xf32>
    %9 = vector.shape_cast %6 : vector<256x128xf32> to vector<1x256x128xf32>
    tpu.vector_store %arg5[%c0_6, %c0_7, %c0_8], %9 {strides = array<i32>} : memref<1x256x128xf32, #tpu.memory_space<vmem>>, vector<1x256x128xf32>,
    return
  }
  func.func @transform_0(%arg0: i32, %arg1: i32) -> (i32, i32, i32) {
    %c0_i32 = arith.constant 0 : i32
    %c0_i32_0 = arith.constant 0 : i32
    return %arg0, %c0_i32, %arg1 : i32, i32, i32
  }
  func.func @transform_1(%arg0: i32, %arg1: i32) -> (i32, i32) {
    %c0_i32 = arith.constant 0 : i32
    %c0_i32_0 = arith.constant 0 : i32
    %c0_i32_1 = arith.constant 0 : i32
    return %c0_i32, %c0_i32_0 : i32, i32
  }
  func.func @transform_2(%arg0: i32, %arg1: i32) -> (i32, i32) {
    %c0_i32 = arith.constant 0 : i32
    %c0_i32_0 = arith.constant 0 : i32
    %c0_i32_1 = arith.constant 0 : i32
    return %c0_i32, %c0_i32_0 : i32, i32
  }
  func.func @transform_3(%arg0: i32, %arg1: i32) -> (i32, i32, i32) {
    %c0_i32 = arith.constant 0 : i32
    %c0_i32_0 = arith.constant 0 : i32
    return %arg0, %arg1, %c0_i32 : i32, i32, i32
  }
}

</mosaic_0001>

<bundles_post_ra>
// kernel: _lambda_.1
= control target key start
LH: loop header
LB: loop body
LE: loop exit
PB: predicated region body
PF: predicated region fallthrough
CT: control target
= control target key end

     0   :  { %8 = vsyncpa [#allocation3], 0  ;;  %s1165_s0 = inlined_call_operand.vmem [shape: bf16[2,64,256], index: 0, kind: input, shape index: {}]   ;;  %s1166_s1 = inlined_call_operand.vmem [shape: bf16[64,128], index: 1, kind: input, shape index: {}]   ;;  %s1167_s2 = inlined_call_operand.vmem [shape: f32[1,128], index: 2, kind: input, shape index: {}]   ;;  %s1168_s3 = inlined_call_operand.hbm [shape: f32[2,256,128], index: 3, kind: output, shape index: {}]  }
   0x1   :  { %10 = vsyncpa [#allocation3 + $0x1], 0  ;;  %s946_s12 = smov 0   ;;  %s948_s13 = smov 0  }
   0x2   :  { %s950_s14 = smov 0   ;;  %s952_s15 = smov 0  }
   0x3   :  { %s954_s16 = smov 0   ;;  %s956_s17 = smov 0  }
   0x4 LB: > { %s657_s18 = sadd.s32 4294967295, %s921_s17   ;;  %s658_s19 = sadd.s32 4294967294, %s921_s17   ;;  %s921_s17 = sphi %s956_s17, %s16_s17   ;;  %s917_s16 = sphi %s954_s16, %s1175_s16   ;;  %s913_s15 = sphi %s952_s15, %s1174_s15   ;;  %s909_s14 = sphi %s950_s14, %s1173_s14   ;;  %s905_s13 = sphi %s948_s13, %s1172_s13   ;;  %s901_s12 = sphi %s946_s12, %s1171_s12  }
   0x5   : > { %s28_s20 = sadd.s32 1, %s917_s16  ;;  %s107_s21 = sadd.s32 1, %s909_s14 }
   0x6   : > { %p30_p0 = scmp.ge.s32.totalorder %s28_s20, 2  ;;  %p117_p1 = scmp.ne.s32.totalorder %s909_s14, %s905_s13 }
   0x7   : > { %p118_p2 = scmp.eq.s32.totalorder %s657_s18, 1  ;;  %p123_p3 = scmp.ne.s32.totalorder %s905_s13, %s901_s12 }
   0x8   : > { %s1177_s20 = smov (%p30_p0, %s28_s20), 0  ;;  %p124_p5 = scmp.eq.s32.totalorder %s658_s19, 1 }
   0x9   : > { %p986_p4 = por %p118_p2, %p117_p1  ;;  %s102_s23 = ssub.s32 %s917_s16, %s1177_s20 }
   0xa   : > { %p661_p6 = scmp.ge.s32.totalorder %s921_s17, 1  ;;  %p105_p7 = scmp.eq.s32.totalorder %s102_s23, 0 }
   0xb   : > { %p993_p8 = por %p124_p5, %p123_p3  ;;  %p161_p9 = scmp.lt.s32.totalorder %s921_s17, 3 }
   0xc   : > { %s999_s25 = scalar_select %p105_p7, %s909_s14, %s107_s21  }
   0xd   : > { %p162_p10 = pnand %p661_p6, %p161_p9 }
   0xe   : > { %p190_p11 = scmp.lt.s32.totalorder (!%p162_p10), %s913_s15, 1  ;;  %v839_v0 = vld [vmem:[%s1166_s1] sm:$0xff] (!%p162_p10)   ;;  %v840_v1 = vld [vmem:[%s1166_s1 + $0x8] sm:$0xff] (!%p162_p10)   ;;  %v841_v2 = vld [vmem:[%s1166_s1 + $0x10] sm:$0xff] (!%p162_p10)   ;;  %vm320_vm0 = vcmask (!%p162_p10), 523264   ;;  %s186_s18 = sand.u32 (!%p162_p10), 1, %s905_s13  }
   0xf   : > { %165 = sbr.rel (%p162_p10) target bundleno = 390 (0x186), region = 32  ;;  %721 = vmatprep.subr.bf16.mxu0 (!%p162_p10), %v839_v0  ;;  %761 = vmatprep.subr.bf16.mxu1 (!%p162_p10), %v839_v0  ;;  %v842_v7 = vld [vmem:[%s1166_s1 + $0x18] sm:$0xff] (!%p162_p10)   ;;  %s662_s19 = sshll.u32 (!%p162_p10), %s186_s18, 8  ;;  %v1040_v28 = vld [vmem:[%s1167_s2] ss:$0 sm:$0xff] (!%p162_p10) }
  0x10   : > { %722 = vmatpush3.bf16.msra.mxu0 (!%p162_p10), %v839_v0  ;;  %765 = vmatpush3.bf16.msra.mxu1 (!%p162_p10), %v839_v0  ;;  %s1045_s26 = scalar_lea.vmem (!%p162_p10), [#allocation2], %s662_s19  ;;  %s700_s27 = sshll.u32 (!%p162_p10), %s913_s15, 12 }
  0x11   : > { %723 = vmatprep.subr.bf16.mxu0 (!%p162_p10), %v840_v1  ;;  %762 = vmatprep.subr.bf16.mxu1 (!%p162_p10), %v840_v1  ;;  %s1107_s30 = scalar_lea.hbm (!%p162_p10), %s1168_s3, %s700_s27  ;;  %s923_s6 = smov (!%p162_p10), [#allocation2]  }
  0x14   : > { %724 = vmatpush3.bf16.msra.mxu0 (!%p162_p10), %v840_v1  ;;  %766 = vmatpush3.bf16.msra.mxu1 (!%p162_p10), %v840_v1 }
  0x15   : > { %725 = vmatprep.subr.bf16.mxu0 (!%p162_p10), %v841_v2  ;;  %763 = vmatprep.subr.bf16.mxu1 (!%p162_p10), %v841_v2 }
  0x16   : > { %s191_s28 = scalar_select %p190_p11, %s913_s15, 1 }
  0x18   : > { %s699_s4 = sshll.u32 %s191_s28, 6  ;;  %726 = vmatpush3.bf16.msra.mxu0 %v841_v2  ;;  %767 = vmatpush3.bf16.msra.mxu1 %v841_v2  ;;  %s578_s28 = sshll.u32 %s1045_s26, 4  ;;  %s1109_s28 = int_to_ptr.vmem [resolvable:$true] %s578_s28 }
  0x19   : > { %s197_s7 = scalar_lea.vmem %s1165_s0, %s699_s4  ;;  %727 = vmatprep.subr.bf16.mxu0 %v842_v7  ;;  %764 = vmatprep.subr.bf16.mxu1 %v842_v7  ;;  %s1119_s4 = scalar_lea.sflag [#allocation3], %s186_s18 }
  0x1a   : > { %v827_v3 = vld [vmem:[%s197_s7 + $0x4] ss:$8 sps:$4 sm:$0xff]   ;;  %v829_v4 = vld [vmem:[%s197_s7] ss:$8 sps:$4 sm:$0xff]   ;;  %v830_v5 = vld [vmem:[%s197_s7 + $0x14] ss:$8 sps:$4 sm:$0xff]  }
  0x1b   : > { %280 = vxpose.xlu1.c.b16.start [1/4] (short) %v827_v3, 128  ;;  %264 = vxpose.xlu0.c.b16.start [1/4] (short) %v829_v4, 128  ;;  %v832_v6 = vld [vmem:[%s197_s7 + $0x10] ss:$8 sps:$4 sm:$0xff]   ;;  %v833_v8 = vld [vmem:[%s197_s7 + $0x24] ss:$8 sps:$4 sm:$0xff]   ;;  %v835_v9 = vld [vmem:[%s197_s7 + $0x20] ss:$8 sps:$4 sm:$0xff]  }
  0x1c   : > { %v836_v10 = vld [vmem:[%s197_s7 + $0x34] ss:$8 sps:$4 sm:$0xff]   ;;  %728 = vmatpush3.bf16.msra.mxu0 %v842_v7  ;;  %v838_v11 = vld [vmem:[%s197_s7 + $0x30] ss:$8 sps:$4 sm:$0xff]   ;;  %768 = vmatpush3.bf16.msra.mxu1 %v842_v7  ;;  %s843_s5 = scalar_lea.vmem %s1109_s28, 4096  ;;  %s847_s7 = sshll.u32 %s923_s6, 4  ;;  %s848_s7 = int_to_ptr.vmem [resolvable:$false] %s847_s7 }
  0x1d   : > { %p844_p12 = scmp.ne.s32.totalorder %s1109_s28, %s843_s5  ;;  %s849_s8 = scalar_lea.vmem %s848_s7, 8192 }
  0x1e   : > { %p850_p1 = scmp.lt.s32.totalorder %s1109_s28, %s848_s7  ;;  %p851_p2 = scmp.lt.s32.totalorder %s849_s8, %s843_s5 }
  0x1f   : > { %281 = vxpose.xlu1.c.b16.cont [2/4] (short) %v830_v5, 128  ;;  %265 = vxpose.xlu0.c.b16.cont [2/4] (short) %v832_v6, 128  ;;  %p845_p13 = pnand %p844_p12, %p986_p4 }
  0x20   : > { %p852_p3 = por %p851_p2, %p850_p1 }
  0x21   : > { %p846_p0 = pneg %p845_p13 }
  0x23   : > { %282 = vxpose.xlu1.c.b16.cont [3/4] (short) %v833_v8, 128  ;;  %266 = vxpose.xlu0.c.b16.cont [3/4] (short) %v835_v9, 128  ;;  %p853_p5 = pnand %p852_p3, %p846_p0 }
  0x27   : > { %283 = vxpose.xlu1.c.b16.end [4/4] (short) %v836_v10, 128  ;;  %267 = vxpose.xlu0.c.b16.end [4/4] (short) %v838_v11, 128 }
  0x81   : > { %v288_v12 = vpop.trf.xlu1  ;;  %v272_v13 = vpop.trf.xlu0 }
  0x82   : > { %745 = vmatprep.mubr.msk.bf16.mxu1 %vm320_vm0, %v288_v12  ;;  %729 = vmatprep.mubr.msk.bf16.mxu0 %vm320_vm0, %v272_v13 }
  0x85   : > { %v289_v14 = vpop.trf.xlu1  ;;  %v273_v15 = vpop.trf.xlu0 }
  0x86   : > { %746 = vmatmul.mubr.msk.bf16.vlgmr.msra.gmra.mrb[0].mxu1 %vm320_vm0, %v289_v14  ;;  %730 = vmatmul.mubr.msk.bf16.vlgmr.msra.gmra.mrb[0].mxu0 %vm320_vm0, %v273_v15 }
  0x89   : > { %v290_v16 = vpop.trf.xlu1  ;;  %v274_v17 = vpop.trf.xlu0 }
  0x8a   : > { %749 = vmatprep.mubr.msk.bf16.mxu1 %vm320_vm0, %v290_v16  ;;  %733 = vmatprep.mubr.msk.bf16.mxu0 %vm320_vm0, %v274_v17 }
  0x8d   : > { %v291_v18 = vpop.trf.xlu1  ;;  %v275_v19 = vpop.trf.xlu0 }
  0x8e   : > { %750 = vmatmul.mubr.msk.bf16.gmra.mrb[4].mxu1 %vm320_vm0, %v291_v18  ;;  %734 = vmatmul.mubr.msk.bf16.gmra.mrb[4].mxu0 %vm320_vm0, %v275_v19 }
  0x91   : > { %v292_v20 = vpop.trf.xlu1  ;;  %v276_v21 = vpop.trf.xlu0 }
  0x92   : > { %753 = vmatprep.mubr.msk.bf16.mxu1 %vm320_vm0, %v292_v20  ;;  %737 = vmatprep.mubr.msk.bf16.mxu0 %vm320_vm0, %v276_v21 }
  0x95   : > { %v293_v22 = vpop.trf.xlu1  ;;  %v277_v23 = vpop.trf.xlu0 }
  0x96   : > { %754 = vmatmul.mubr.msk.bf16.gmra.mrb[8].mxu1 %vm320_vm0, %v293_v22  ;;  %738 = vmatmul.mubr.msk.bf16.gmra.mrb[8].mxu0 %vm320_vm0, %v277_v23 }
  0x99   : > { %v294_v24 = vpop.trf.xlu1  ;;  %v278_v25 = vpop.trf.xlu0 }
  0x9a   : > { %757 = vmatprep.mubr.msk.bf16.mxu1 %vm320_vm0, %v294_v24  ;;  %741 = vmatprep.mubr.msk.bf16.mxu0 %vm320_vm0, %v278_v25 }
  0x9d   : > { %v295_v26 = vpop.trf.xlu1  ;;  %v279_v27 = vpop.trf.xlu0 }
  0x9e   : > { %758 = vmatmul.mubr.msk.bf16.gmra.mrb[12].mxu1 %vm320_vm0, %v295_v26  ;;  %742 = vmatmul.mubr.msk.bf16.gmra.mrb[12].mxu0 %vm320_vm0, %v279_v27 }
 0x159   : > { %v747_v29 = vpop.f32.mrb[0].mxu1  ;;  %v731_v30 = vpop.f32.mrb[0].mxu0 }
 0x15a   : > { %v476_v31 = vadd.f32 %v747_v29, %v1040_v28  ;;  %v467_v32 = vpop.f32.mrb[1].mxu1  ;;  %v412_v33 = vadd.f32 %v731_v30, %v1040_v28  ;;  %v403_v34 = vpop.f32.mrb[1].mxu0 }
 0x15b   : > { %v468_v35 = vadd.f32 %v1040_v28, %v467_v32  ;;  %v748_v36 = vpop.f32.mrb[2].mxu1  ;;  %v404_v37 = vadd.f32 %v1040_v28, %v403_v34  ;;  %v732_v38 = vpop.f32.mrb[2].mxu0 }
 0x15c   : > { %548 = vst [vmem:[%s1045_s26 + $0x90] sm:$0xff] %v476_v31  ;;  %v479_v39 = vadd.f32 %v748_v36, %v1040_v28  ;;  %v470_v40 = vpop.f32.mrb[3].mxu1  ;;  %532 = vst [vmem:[%s1045_s26 + $0x10] sm:$0xff] %v412_v33  ;;  %v415_v41 = vadd.f32 %v732_v38, %v1040_v28  ;;  %v406_v42 = vpop.f32.mrb[3].mxu0 }
 0x15d   : > { %546 = vst [vmem:[%s1045_s26 + $0x80] sm:$0xff] %v468_v35  ;;  %v471_v43 = vadd.f32 %v1040_v28, %v470_v40  ;;  %530 = vst [vmem:[%s1045_s26] sm:$0xff] %v404_v37  ;;  %v407_v44 = vadd.f32 %v1040_v28, %v406_v42 }
 0x15e   : > { %549 = vst [vmem:[%s1045_s26 + $0x98] sm:$0xff] %v479_v39  ;;  %533 = vst [vmem:[%s1045_s26 + $0x18] sm:$0xff] %v415_v41 }
 0x15f   : > { %547 = vst [vmem:[%s1045_s26 + $0x88] sm:$0xff] %v471_v43  ;;  %531 = vst [vmem:[%s1045_s26 + $0x8] sm:$0xff] %v407_v44 }
 0x161   : > { %v751_v45 = vpop.f32.mrb[4].mxu1  ;;  %v735_v46 = vpop.f32.mrb[4].mxu0 }
 0x162   : > { %v492_v47 = vadd.f32 %v751_v45, %v1040_v28  ;;  %v483_v48 = vpop.f32.mrb[5].mxu1  ;;  %v428_v49 = vadd.f32 %v735_v46, %v1040_v28  ;;  %v419_v50 = vpop.f32.mrb[5].mxu0 }
 0x163   : > { %v484_v51 = vadd.f32 %v1040_v28, %v483_v48  ;;  %v752_v52 = vpop.f32.mrb[6].mxu1  ;;  %v420_v53 = vadd.f32 %v1040_v28, %v419_v50  ;;  %v736_v54 = vpop.f32.mrb[6].mxu0 }
 0x164   : > { %552 = vst [vmem:[%s1045_s26 + $0xb0] sm:$0xff] %v492_v47  ;;  %v495_v55 = vadd.f32 %v752_v52, %v1040_v28  ;;  %v486_v56 = vpop.f32.mrb[7].mxu1  ;;  %536 = vst [vmem:[%s1045_s26 + $0x30] sm:$0xff] %v428_v49  ;;  %v431_v57 = vadd.f32 %v736_v54, %v1040_v28  ;;  %v422_v58 = vpop.f32.mrb[7].mxu0 }
 0x165   : > { %550 = vst [vmem:[%s1045_s26 + $0xa0] sm:$0xff] %v484_v51  ;;  %v487_v59 = vadd.f32 %v1040_v28, %v486_v56  ;;  %534 = vst [vmem:[%s1045_s26 + $0x20] sm:$0xff] %v420_v53  ;;  %v423_v60 = vadd.f32 %v1040_v28, %v422_v58 }
 0x166   : > { %553 = vst [vmem:[%s1045_s26 + $0xb8] sm:$0xff] %v495_v55  ;;  %537 = vst [vmem:[%s1045_s26 + $0x38] sm:$0xff] %v431_v57 }
 0x167   : > { %551 = vst [vmem:[%s1045_s26 + $0xa8] sm:$0xff] %v487_v59  ;;  %535 = vst [vmem:[%s1045_s26 + $0x28] sm:$0xff] %v423_v60 }
 0x169   : > { %v755_v61 = vpop.f32.mrb[8].mxu1  ;;  %v739_v62 = vpop.f32.mrb[8].mxu0 }
 0x16a   : > { %v508_v63 = vadd.f32 %v755_v61, %v1040_v28  ;;  %v499_v0 = vpop.f32.mrb[9].mxu1  ;;  %v444_v1 = vadd.f32 %v739_v62, %v1040_v28  ;;  %v435_v2 = vpop.f32.mrb[9].mxu0 }
 0x16b   : > { %v500_v3 = vadd.f32 %v1040_v28, %v499_v0  ;;  %v756_v4 = vpop.f32.mrb[10].mxu1  ;;  %v436_v5 = vadd.f32 %v1040_v28, %v435_v2  ;;  %v740_v6 = vpop.f32.mrb[10].mxu0 }
 0x16c   : > { %556 = vst [vmem:[%s1045_s26 + $0xd0] sm:$0xff] %v508_v63  ;;  %v511_v7 = vadd.f32 %v756_v4, %v1040_v28  ;;  %v502_v8 = vpop.f32.mrb[11].mxu1  ;;  %540 = vst [vmem:[%s1045_s26 + $0x50] sm:$0xff] %v444_v1  ;;  %v447_v9 = vadd.f32 %v740_v6, %v1040_v28  ;;  %v438_v10 = vpop.f32.mrb[11].mxu0 }
 0x16d   : > { %554 = vst [vmem:[%s1045_s26 + $0xc0] sm:$0xff] %v500_v3  ;;  %v503_v11 = vadd.f32 %v1040_v28, %v502_v8  ;;  %538 = vst [vmem:[%s1045_s26 + $0x40] sm:$0xff] %v436_v5  ;;  %v439_v12 = vadd.f32 %v1040_v28, %v438_v10 }
 0x16e   : > { %557 = vst [vmem:[%s1045_s26 + $0xd8] sm:$0xff] %v511_v7  ;;  %541 = vst [vmem:[%s1045_s26 + $0x58] sm:$0xff] %v447_v9 }
 0x16f   : > { %555 = vst [vmem:[%s1045_s26 + $0xc8] sm:$0xff] %v503_v11  ;;  %539 = vst [vmem:[%s1045_s26 + $0x48] sm:$0xff] %v439_v12 }
 0x171   : > { %v759_v13 = vpop.f32.mrb[12].mxu1  ;;  %v743_v14 = vpop.f32.mrb[12].mxu0 }
 0x172   : > { %v524_v15 = vadd.f32 %v759_v13, %v1040_v28  ;;  %v515_v16 = vpop.f32.mrb[13].mxu1  ;;  %v460_v17 = vadd.f32 %v743_v14, %v1040_v28  ;;  %v451_v18 = vpop.f32.mrb[13].mxu0 }
 0x173   : > { %v516_v19 = vadd.f32 %v1040_v28, %v515_v16  ;;  %v760_v20 = vpop.f32.mrb[14].mxu1  ;;  %v452_v21 = vadd.f32 %v1040_v28, %v451_v18  ;;  %v744_v22 = vpop.f32.mrb[14].mxu0 }
 0x174   : > { %560 = vst [vmem:[%s1045_s26 + $0xf0] sm:$0xff] %v524_v15  ;;  %v527_v23 = vadd.f32 %v760_v20, %v1040_v28  ;;  %v518_v24 = vpop.f32.mrb[15].mxu1  ;;  %544 = vst [vmem:[%s1045_s26 + $0x70] sm:$0xff] %v460_v17  ;;  %v463_v25 = vadd.f32 %v744_v22, %v1040_v28  ;;  %v454_v26 = vpop.f32.mrb[15].mxu0 }
 0x175   : > { %558 = vst [vmem:[%s1045_s26 + $0xe0] sm:$0xff] %v516_v19  ;;  %v519_v27 = vadd.f32 %v1040_v28, %v518_v24  ;;  %542 = vst [vmem:[%s1045_s26 + $0x60] sm:$0xff] %v452_v21  ;;  %v455_v29 = vadd.f32 %v1040_v28, %v454_v26 }
 0x176   : > { %561 = vst [vmem:[%s1045_s26 + $0xf8] sm:$0xff] %v527_v23  ;;  %545 = vst [vmem:[%s1045_s26 + $0x78] sm:$0xff] %v463_v25 }
 0x177   : > { %559 = vst [vmem:[%s1045_s26 + $0xe8] sm:$0xff] %v519_v27  ;;  %543 = vst [vmem:[%s1045_s26 + $0x68] sm:$0xff] %v455_v29 }
 0x178   : > { %856 = shalt.err (!%p853_p5)
}
 0x179   : > { %s857_s9 = scalar_lea.hbm %s1107_s30, 4096  ;;  %s861_s18 = scalar_lea.hbm %s1168_s3, 8192 }
 0x17a   : > { %p858_p6 = scmp.ne.s32.totalorder %s1107_s30, %s857_s9  ;;  %p862_p10 = scmp.lt.u32.totalorder %s1107_s30, %s1168_s3 }
 0x17b   : > { %p863_p11 = scmp.lt.u32.totalorder %s861_s18, %s857_s9  ;;  %p865_p13 = scmp.lt.u32.totalorder %s857_s9, %s1107_s30 }
 0x17c   : > { %p859_p7 = pnand %p858_p6, %p986_p4 }
 0x17d   : > { %p864_p12 = por %p863_p11, %p862_p10 }
 0x17e   : > { %p860_p9 = pneg %p859_p7 }
 0x17f   : > { %p866_p0 = por %p865_p13, %p864_p12 }
 0x181   : > { %p867_p1 = pnand %p866_p0, %p860_p9 }
 0x183   : > { %870 = shalt.err (!%p867_p1)
}
 0x184   : > { %s924_s23 = smov 128   ;;  %s925_s26 = smov 8  }
 0x185   : > { %769 = dma.vmem_to_hbm [thread:$0]  (%p986_p4), %s1109_s28, 4096, %s1107_s30, %s1119_s4, %s924_s23, %s924_s23, %s925_s26  }
 0x186 PF: > { %p775_p2 = scmp.ge.s32.totalorder %s921_s17, 2  ;;  %s593_s27 = sand.u32 1, %s901_s12  }
 0x187   : > { %s594_s15 = scalar_lea.sflag [#allocation3], %s593_s27 }
 0x188   : > { %p772_p3 = pnand %p775_p2, %p993_p8 }
 0x18a   : > { %896 = dma.done.wait (!%p772_p3), %s594_s15, 4096  }
 0x18b   : > { %898 = vsyncadd (!%p772_p3), %s594_s15, 4294963200  ;;  %s16_s17 = sadd.s32 1, %s921_s17   ;;  %s1171_s12 = smov %s905_s13 }
 0x18c   : > { %p13_p5 = scmp.ge.s32.totalorder %s16_s17, 4   ;;  %s1172_s13 = smov %s909_s14 }
 0x18d   : > { %s1173_s14 = smov %s999_s25  ;;  %s1174_s15 = smov %s917_s16 }
 0x18e   : > { %s1175_s16 = smov %s1177_s20  ;;  %15 = sbr.rel (!%p13_p5) target bundleno = 4 (0x4), region = 67 }
 0x195   :  { %599 = vsyncpa [#allocation3], 1 }
 0x196   :  { %601 = vsyncpa [#allocation3 + $0x1], 1 }

</bundles_post_ra>
